<compile_context>
chip_gen: v5e
topology: v5e:2x2
jax: 0.10.0
libtpu: 0.0.40
codegen_flags: <defaults>
</compile_context>

<pallas_src>
import functools

import jax
import jax.numpy as jnp
from jax.experimental import pallas as pl
from jax.experimental.pallas import tpu as pltpu


def _round_up(n, m):
    return ((n + m - 1) // m) * m


def _tlstm_kernel(a_ref, c_ref, dt_ref, w_ref, b_ref,
                  cell_out_ref, hid_out_ref, *, hp):
    """One batch tile of the fused TLSTM step.

    a_ref : (TM, Kp)  bf16   fused activations [x | h | c] (zero padded)
    c_ref : (TM, Hp)  f32    previous cell state (zero padded)
    dt_ref: (TM, Hp)  f32    transed_delta_t pre-broadcast over hidden dim
    w_ref : (Kp, 5Hp) bf16   fused weights  (VMEM-resident across grid)
    b_ref : (1, 5Hp)  f32    fused bias     (VMEM-resident across grid)
    """
    # Single fused MXU matmul with f32 accumulation.
    acts = jnp.dot(a_ref[...], w_ref[...],
                   preferred_element_type=jnp.float32) + b_ref[...]

    # Lane-aligned gate slices (each block is hp = multiple of 128 wide).
    ingate     = jax.nn.sigmoid(acts[:, 0 * hp:1 * hp])
    forgate    = jax.nn.sigmoid(acts[:, 1 * hp:2 * hp])
    cellgate   = jnp.tanh(acts[:, 2 * hp:3 * hp])
    outgate    = jax.nn.sigmoid(acts[:, 3 * hp:4 * hp])
    cell_short = jnp.tanh(acts[:, 4 * hp:5 * hp])        # c2s(cell)

    c = c_ref[...]
    dt = dt_ref[...]
    cell_new = c - cell_short + cell_short * dt
    cell_output = forgate * cell_new + ingate * cellgate
    hidden_output = outgate * jnp.tanh(cell_output)

    cell_out_ref[...] = cell_output.astype(cell_out_ref.dtype)
    hid_out_ref[...] = hidden_output.astype(hid_out_ref.dtype)


@jax.jit
def tlstm_forward(x, cell, hidden, transed_delta_t, params):
    """Pallas TLSTM forward (single step).

    x: (B, I), cell/hidden: (B, H), transed_delta_t: (B, 1)
    params: wi (I,4H), bi (1,4H), wh (H,4H), bh (1,4H), wc (H,H), bc (1,H)
            (all f32, stored as PyTorch weight.T so the kernel does x @ W).
    Returns (cell_output, hidden_output), each (B, H) f32.
    """
    f32 = jnp.float32
    B, I = x.shape
    H = cell.shape[1]

    Hp = _round_up(H, 128)          # lane-aligned gate block width
    K = I + 2 * H                   # fused contraction dim [x | h | c]
    Kp = _round_up(K, 128)
    Bp = _round_up(B, 8)
    TM = min(Bp, 128)               # batch tile (rows per grid step)
    Bp = _round_up(Bp, TM)

    # ---- Fuse / pad weights and bias (would be precomputed once in a real model).
    w = jnp.zeros((Kp, 5 * Hp), f32)
    b = jnp.zeros((1, 5 * Hp), f32)
    for g in range(4):
        w = w.at[0:I, g * Hp:g * Hp + H].set(params["wi"][:, g * H:(g + 1) * H])
        w = w.at[I:I + H, g * Hp:g * Hp + H].set(params["wh"][:, g * H:(g + 1) * H])
        b = b.at[:, g * Hp:g * Hp + H].set(
            params["bi"][:, g * H:(g + 1) * H] + params["bh"][:, g * H:(g + 1) * H])
    w = w.at[I + H:I + 2 * H, 4 * Hp:4 * Hp + H].set(params["wc"])
    b = b.at[:, 4 * Hp:4 * Hp + H].set(params["bc"])
    w = w.astype(jnp.bfloat16)

    # ---- Fused, padded activations [x | h | c] in bf16 for the MXU.
    a = jnp.zeros((Bp, Kp), f32)
    a = a.at[:B, 0:I].set(x)
    a = a.at[:B, I:I + H].set(hidden)
    a = a.at[:B, I + H:I + 2 * H].set(cell)
    a = a.astype(jnp.bfloat16)

    # f32 state + pre-broadcast delta-t for the elementwise path.
    c_pad = jnp.zeros((Bp, Hp), f32).at[:B, :H].set(cell)
    dt_pad = jnp.zeros((Bp, Hp), f32).at[:B, :H].set(
        jnp.broadcast_to(transed_delta_t, (B, H)))

    grid = (Bp // TM,)
    kernel = functools.partial(_tlstm_kernel, hp=Hp)

    c_out_p, h_out_p = pl.pallas_call(
        kernel,
        out_shape=(jax.ShapeDtypeStruct((Bp, Hp), f32),
                   jax.ShapeDtypeStruct((Bp, Hp), f32)),
        grid=grid,
        in_specs=[
            pl.BlockSpec((TM, Kp), lambda m: (m, 0)),       # fused acts (bf16)
            pl.BlockSpec((TM, Hp), lambda m: (m, 0)),       # cell (f32)
            pl.BlockSpec((TM, Hp), lambda m: (m, 0)),       # delta-t (f32)
            pl.BlockSpec((Kp, 5 * Hp), lambda m: (0, 0)),   # weights, VMEM-resident
            pl.BlockSpec((1, 5 * Hp), lambda m: (0, 0)),    # bias, VMEM-resident
        ],
        out_specs=(pl.BlockSpec((TM, Hp), lambda m: (m, 0)),
                   pl.BlockSpec((TM, Hp), lambda m: (m, 0))),
        compiler_params=pltpu.CompilerParams(
            dimension_semantics=("parallel",),              # megacore on v7x
            vmem_limit_bytes=48 * 1024 * 1024),
    )(a, c_pad, dt_pad, w, b)

    return c_out_p[:B, :H], h_out_p[:B, :H]


def tlstm_reference(x, cell, hidden, dt, params):
    """Pure-JAX f32 reference matching the PyTorch forward exactly."""
    cell_short = jnp.tanh(cell @ params["wc"] + params["bc"])
    cell_new = cell - cell_short + cell_short * dt
    gates = x @ params["wi"] + params["bi"] + hidden @ params["wh"] + params["bh"]
    H = cell.shape[-1]
    i, f, g, o = (gates[:, k * H:(k + 1) * H] for k in range(4))
    i = jax.nn.sigmoid(i)
    f = jax.nn.sigmoid(f)
    g = jnp.tanh(g)
    o = jax.nn.sigmoid(o)
    c_out = f * cell_new + i * g
    h_out = o * jnp.tanh(c_out)
    return c_out, h_out


def init_params(key, input_size, hidden_size):
    ks = jax.random.split(key, 6)
    scale = 0.1
    return {
        # stored as (in, out) == PyTorch weight.T
        "wi": scale * jax.random.normal(ks[0], (input_size, 4 * hidden_size), jnp.float32),
        "bi": scale * jax.random.normal(ks[1], (1, 4 * hidden_size), jnp.float32),
        "wh": scale * jax.random.normal(ks[2], (hidden_size, 4 * hidden_size), jnp.float32),
        "bh": scale * jax.random.normal(ks[3], (1, 4 * hidden_size), jnp.float32),
        "wc": scale * jax.random.normal(ks[4], (hidden_size, hidden_size), jnp.float32),
        "bc": scale * jax.random.normal(ks[5], (1, hidden_size), jnp.float32),
    }


if __name__ == "__main__":
    B, I, H = 8, 16, 32
    key = jax.random.PRNGKey(0)
    kx, kc, kh, kd, kp = jax.random.split(key, 5)

    x = jax.random.normal(kx, (B, I), jnp.float32)
    cell = jax.random.normal(kc, (B, H), jnp.float32)
    hidden = jax.random.normal(kh, (B, H), jnp.float32)
    # transed_delta_t: one scalar per batch element, broadcast over hidden dim
    dt = jax.nn.sigmoid(jax.random.normal(kd, (B, 1), jnp.float32))
    params = init_params(kp, I, H)

    c_out, h_out = tlstm_forward(x, cell, hidden, dt, params)
    jax.block_until_ready((c_out, h_out))

    c_ref, h_ref = tlstm_reference(x, cell, hidden, dt, params)
    # bf16 weights/activations on the MXU path -> loosened tolerance vs f32 ref.
    assert jnp.allclose(c_out, c_ref, atol=2e-2, rtol=2e-2), \
        f"cell mismatch, max abs err {jnp.max(jnp.abs(c_out - c_ref))}"
    assert jnp.allclose(h_out, h_ref, atol=2e-2, rtol=2e-2), \
        f"hidden mismatch, max abs err {jnp.max(jnp.abs(h_out - h_ref))}"

    print("KERNEL_OK")
</pallas_src>

<mosaic_0001>
module attributes {stable_mosaic.version = 11 : i64} {
  func.func @_tlstm_kernel(%arg0: i32, %arg1: memref<8x128xbf16, #tpu.memory_space<vmem>>, %arg2: memref<8x128xf32, #tpu.memory_space<vmem>>, %arg3: memref<8x128xf32, #tpu.memory_space<vmem>>, %arg4: memref<128x640xbf16, #tpu.memory_space<vmem>>, %arg5: memref<1x640xf32, #tpu.memory_space<vmem>>, %arg6: memref<8x128xf32, #tpu.memory_space<vmem>>, %arg7: memref<8x128xf32, #tpu.memory_space<vmem>>) attributes {dimension_semantics = [#tpu.dimension_semantics<parallel>], iteration_bounds = array<i64: 1>, scalar_prefetch = 0 : i64, scratch_operands = 0 : i64, tpu.core_type = #tpu.core_type<tc>, window_params = [{transform_indices = @transform_0, window_bounds = array<i64: 8, 128>}, {transform_indices = @transform_1, window_bounds = array<i64: 8, 128>}, {transform_indices = @transform_2, window_bounds = array<i64: 8, 128>}, {pipeline_mode = #tpu.pipeline_mode<synchronous>, transform_indices = @transform_3, window_bounds = array<i64: 128, 640>}, {pipeline_mode = #tpu.pipeline_mode<synchronous>, transform_indices = @transform_4, window_bounds = array<i64: 1, 640>}, {transform_indices = @transform_5, window_bounds = array<i64: 8, 128>}, {transform_indices = @transform_6, window_bounds = array<i64: 8, 128>}]} {
    %c0 = arith.constant 0 : index
    %c0_0 = arith.constant 0 : index
    %0 = vector.load %arg1[%c0, %c0_0] : memref<8x128xbf16, #tpu.memory_space<vmem>>, vector<8x128xbf16>
    %c0_1 = arith.constant 0 : index
    %c0_2 = arith.constant 0 : index
    %1 = vector.load %arg4[%c0_1, %c0_2] : memref<128x640xbf16, #tpu.memory_space<vmem>>, vector<128x640xbf16>
    %cst = arith.constant dense<0.000000e+00> : vector<8x640xf32>
    %2 = tpu.matmul %0, %1, %cst {dimension_numbers = #tpu.dot_dimension_numbers<[1], [0], [0], [1], [0, 0, 1, 1], [], []>} : vector<8x128xbf16>, vector<128x640xbf16>, vector<8x640xf32> -> vector<8x640xf32>
    %c0_3 = arith.constant 0 : index
    %c0_4 = arith.constant 0 : index
    %3 = vector.load %arg5[%c0_3, %c0_4] : memref<1x640xf32, #tpu.memory_space<vmem>>, vector<1x640xf32>
    %4 = vector.broadcast %3 : vector<1x640xf32> to vector<8x640xf32>
    %5 = arith.addf %2, %4 : vector<8x640xf32>
    %6 = vector.extract_strided_slice %5 {offsets = [0, 0], sizes = [8, 128], strides = [1, 1]} : vector<8x640xf32> to vector<8x128xf32>
    %7 = arith.negf %6 : vector<8x128xf32>
    %8 = math.exp %7 : vector<8x128xf32>
    %cst_5 = arith.constant 1.000000e+00 : f32
    %9 = vector.broadcast %cst_5 : f32 to vector<8x128xf32>
    %10 = arith.addf %9, %8 : vector<8x128xf32>
    %11 = arith.divf %9, %10 : vector<8x128xf32>
    %12 = vector.extract_strided_slice %5 {offsets = [0, 128], sizes = [8, 128], strides = [1, 1]} : vector<8x640xf32> to vector<8x128xf32>
    %13 = arith.negf %12 : vector<8x128xf32>
    %14 = math.exp %13 : vector<8x128xf32>
    %cst_6 = arith.constant 1.000000e+00 : f32
    %15 = vector.broadcast %cst_6 : f32 to vector<8x128xf32>
    %16 = arith.addf %15, %14 : vector<8x128xf32>
    %17 = arith.divf %15, %16 : vector<8x128xf32>
    %18 = vector.extract_strided_slice %5 {offsets = [0, 256], sizes = [8, 128], strides = [1, 1]} : vector<8x640xf32> to vector<8x128xf32>
    %19 = math.tanh %18 : vector<8x128xf32>
    %20 = vector.extract_strided_slice %5 {offsets = [0, 384], sizes = [8, 128], strides = [1, 1]} : vector<8x640xf32> to vector<8x128xf32>
    %21 = arith.negf %20 : vector<8x128xf32>
    %22 = math.exp %21 : vector<8x128xf32>
    %cst_7 = arith.constant 1.000000e+00 : f32
    %23 = vector.broadcast %cst_7 : f32 to vector<8x128xf32>
    %24 = arith.addf %23, %22 : vector<8x128xf32>
    %25 = arith.divf %23, %24 : vector<8x128xf32>
    %26 = vector.extract_strided_slice %5 {offsets = [0, 512], sizes = [8, 128], strides = [1, 1]} : vector<8x640xf32> to vector<8x128xf32>
    %27 = math.tanh %26 : vector<8x128xf32>
    %c0_8 = arith.constant 0 : index
    %c0_9 = arith.constant 0 : index
    %28 = vector.load %arg2[%c0_8, %c0_9] : memref<8x128xf32, #tpu.memory_space<vmem>>, vector<8x128xf32>
    %c0_10 = arith.constant 0 : index
    %c0_11 = arith.constant 0 : index
    %29 = vector.load %arg3[%c0_10, %c0_11] : memref<8x128xf32, #tpu.memory_space<vmem>>, vector<8x128xf32>
    %30 = arith.subf %28, %27 : vector<8x128xf32>
    %31 = arith.mulf %27, %29 : vector<8x128xf32>
    %32 = arith.addf %30, %31 : vector<8x128xf32>
    %33 = arith.mulf %17, %32 : vector<8x128xf32>
    %34 = arith.mulf %11, %19 : vector<8x128xf32>
    %35 = arith.addf %33, %34 : vector<8x128xf32>
    %36 = math.tanh %35 : vector<8x128xf32>
    %37 = arith.mulf %25, %36 : vector<8x128xf32>
    %c0_12 = arith.constant 0 : index
    %c0_13 = arith.constant 0 : index
    %38 = vector.load %arg6[%c0_12, %c0_13] : memref<8x128xf32, #tpu.memory_space<vmem>>, vector<8x128xf32>
    tpu.vector_store %arg6[%c0_12, %c0_13], %35 {strides = array<i32>} : memref<8x128xf32, #tpu.memory_space<vmem>>, vector<8x128xf32>,
    %c0_14 = arith.constant 0 : index
    %c0_15 = arith.constant 0 : index
    %39 = vector.load %arg7[%c0_14, %c0_15] : memref<8x128xf32, #tpu.memory_space<vmem>>, vector<8x128xf32>
    tpu.vector_store %arg7[%c0_14, %c0_15], %37 {strides = array<i32>} : memref<8x128xf32, #tpu.memory_space<vmem>>, vector<8x128xf32>,
    return
  }
  func.func @transform_0(%arg0: i32) -> (i32, i32) {
    %c0_i32 = arith.constant 0 : i32
    %c0_i32_0 = arith.constant 0 : i32
    return %arg0, %c0_i32 : i32, i32
  }
  func.func @transform_1(%arg0: i32) -> (i32, i32) {
    %c0_i32 = arith.constant 0 : i32
    %c0_i32_0 = arith.constant 0 : i32
    return %arg0, %c0_i32 : i32, i32
  }
  func.func @transform_2(%arg0: i32) -> (i32, i32) {
    %c0_i32 = arith.constant 0 : i32
    %c0_i32_0 = arith.constant 0 : i32
    return %arg0, %c0_i32 : i32, i32
  }
  func.func @transform_3(%arg0: i32) -> (i32, i32) {
    %c0_i32 = arith.constant 0 : i32
    %c0_i32_0 = arith.constant 0 : i32
    %c0_i32_1 = arith.constant 0 : i32
    return %c0_i32, %c0_i32_0 : i32, i32
  }
  func.func @transform_4(%arg0: i32) -> (i32, i32) {
    %c0_i32 = arith.constant 0 : i32
    %c0_i32_0 = arith.constant 0 : i32
    %c0_i32_1 = arith.constant 0 : i32
    return %c0_i32, %c0_i32_0 : i32, i32
  }
  func.func @transform_5(%arg0: i32) -> (i32, i32) {
    %c0_i32 = arith.constant 0 : i32
    %c0_i32_0 = arith.constant 0 : i32
    return %arg0, %c0_i32 : i32, i32
  }
  func.func @transform_6(%arg0: i32) -> (i32, i32) {
    %c0_i32 = arith.constant 0 : i32
    %c0_i32_0 = arith.constant 0 : i32
    return %arg0, %c0_i32 : i32, i32
  }
}

</mosaic_0001>

<bundles_post_ra>
// kernel: tlstm_forward.1
= control target key start
LH: loop header
LB: loop body
LE: loop exit
PB: predicated region body
PF: predicated region fallthrough
CT: control target
= control target key end

     0   :  { %12 = vsyncpa [#allocation3], 0  ;;  %s1044_s0 = inlined_call_operand.vmem [shape: bf16[8,128], index: 0, kind: input, shape index: {}]   ;;  %s1045_s1 = inlined_call_operand.vmem [shape: f32[8,128], index: 1, kind: input, shape index: {}]   ;;  %s1046_s2 = inlined_call_operand.vmem [shape: f32[8,128], index: 2, kind: input, shape index: {}]   ;;  %s1047_s3 = inlined_call_operand.vmem [shape: bf16[128,640], index: 3, kind: input, shape index: {}]   ;;  %s1048_s4 = inlined_call_operand.vmem [shape: f32[1,640], index: 4, kind: input, shape index: {}]   ;;  %s1049_s5 = inlined_call_operand.hbm [shape: f32[8,128], index: 5, kind: output, shape index: {0}]   ;;  %s1050_s6 = inlined_call_operand.hbm [shape: f32[8,128], index: 6, kind: output, shape index: {1}]  }
   0x1   :  { %v603_v0 = vld [vmem:[%s1047_s3 + $0x118] sm:$0xf]  ;;  %v661_v1 = vld [vmem:[%s1047_s3 + $0x128] sm:$0xf0]  ;;  %v659_v2 = vld [vmem:[%s1047_s3 + $0x11c] sm:$0xf] }
   0x2   :  { %v604_v3 = vor.u32 %v661_v1, %v603_v0  ;;  %v605_v4 = vld [vmem:[%s1047_s3 + $0x12c] sm:$0xf0]  ;;  %v656_v6 = vld [vmem:[%s1047_s3 + $0x100] sm:$0xf0]  ;;  %v654_v8 = vld [vmem:[%s1047_s3 + $0xf4] sm:$0xf] }
   0x3   :  { %v583_v5 = vld [vmem:[%s1047_s3 + $0xf0] sm:$0xf]  ;;  %v608_v7 = vor.u32 %v659_v2, %v605_v4  ;;  %v585_v9 = vld [vmem:[%s1047_s3 + $0x104] sm:$0xf0]  ;;  %v660_v10 = vld [vmem:[%s1047_s3 + $0x124] sm:$0xf] }
   0x4   :  { %293 = vmatpush.bf16.msra.mxu0 %v604_v3  ;;  %v584_v11 = vor.u32 %v656_v6, %v583_v5  ;;  %v613_v12 = vld [vmem:[%s1047_s3 + $0x134] sm:$0xf0]  ;;  %v588_v13 = vor.u32 %v654_v8, %v585_v9  ;;  %v563_v15 = vld [vmem:[%s1047_s3 + $0xc8] sm:$0xf]  ;;  %v651_v16 = vld [vmem:[%s1047_s3 + $0xd8] sm:$0xf0] }
   0x5   :  { %306 = vmatpush.bf16.msra.mxu1 %v608_v7  ;;  %v616_v14 = vor.u32 %v660_v10, %v613_v12  ;;  %v655_v17 = vld [vmem:[%s1047_s3 + $0xfc] sm:$0xf]  ;;  %v649_v18 = vld [vmem:[%s1047_s3 + $0xcc] sm:$0xf]  ;;  %v565_v19 = vld [vmem:[%s1047_s3 + $0xdc] sm:$0xf0]  ;;  %v564_v23 = vor.u32 %v651_v16, %v563_v15 }
   0x6   :  { %v593_v20 = vld [vmem:[%s1047_s3 + $0x10c] sm:$0xf0]  ;;  %v650_v22 = vld [vmem:[%s1047_s3 + $0xd4] sm:$0xf]  ;;  %v573_v24 = vld [vmem:[%s1047_s3 + $0xe4] sm:$0xf0]  ;;  %v568_v27 = vor.u32 %v649_v18, %v565_v19 }
   0x7   :  { %332 = vmatpush.bf16.msra.mxu3 %v616_v14  ;;  %v596_v21 = vor.u32 %v655_v17, %v593_v20  ;;  %v611_v25 = vld [vmem:[%s1047_s3 + $0x120] sm:$0xf]  ;;  %v662_v26 = vld [vmem:[%s1047_s3 + $0x130] sm:$0xf0]  ;;  %v644_v31 = vld [vmem:[%s1047_s3 + $0xa4] sm:$0xf]  ;;  %v576_v33 = vor.u32 %v650_v22, %v573_v24 }
   0x8   :  { %294 = vmatpush.bf16.msra.mxu0 %v584_v11  ;;  %v543_v28 = vld [vmem:[%s1047_s3 + $0xa0] sm:$0xf]  ;;  %v646_v29 = vld [vmem:[%s1047_s3 + $0xb0] sm:$0xf0]  ;;  %v612_v30 = vor.u32 %v662_v26, %v611_v25  ;;  %v545_v32 = vld [vmem:[%s1047_s3 + $0xb4] sm:$0xf0] }
   0x9   :  { %307 = vmatpush.bf16.msra.mxu1 %v588_v13  ;;  %v591_v34 = vld [vmem:[%s1047_s3 + $0xf8] sm:$0xf]  ;;  %v657_v35 = vld [vmem:[%s1047_s3 + $0x108] sm:$0xf0]  ;;  %v544_v36 = vor.u32 %v646_v29, %v543_v28  ;;  %v553_v38 = vld [vmem:[%s1047_s3 + $0xbc] sm:$0xf0]  ;;  %v548_v40 = vor.u32 %v644_v31, %v545_v32 }
   0xa   :  { %319 = vmatpush.bf16.msra.mxu2 %v612_v30  ;;  %v645_v37 = vld [vmem:[%s1047_s3 + $0xac] sm:$0xf]  ;;  %v592_v39 = vor.u32 %v657_v35, %v591_v34  ;;  %v523_v41 = vld [vmem:[%s1047_s3 + $0x78] sm:$0xf]  ;;  %v571_v43 = vld [vmem:[%s1047_s3 + $0xd0] sm:$0xf] }
   0xb   :  { %333 = vmatpush.bf16.msra.mxu3 %v596_v21  ;;  %v641_v42 = vld [vmem:[%s1047_s3 + $0x88] sm:$0xf0]  ;;  %v639_v44 = vld [vmem:[%s1047_s3 + $0x7c] sm:$0xf]  ;;  %v525_v45 = vld [vmem:[%s1047_s3 + $0x8c] sm:$0xf0]  ;;  %v556_v47 = vor.u32 %v645_v37, %v553_v38 }
   0xc   :  { %295 = vmatpush.bf16.msra.mxu0 %v564_v23  ;;  %v652_v46 = vld [vmem:[%s1047_s3 + $0xe0] sm:$0xf0]  ;;  %v524_v50 = vor.u32 %v641_v42, %v523_v41  ;;  %v533_v51 = vld [vmem:[%s1047_s3 + $0x94] sm:$0xf0]  ;;  %v551_v52 = vld [vmem:[%s1047_s3 + $0xa8] sm:$0xf]  ;;  %v528_v54 = vor.u32 %v639_v44, %v525_v45 }
   0xd   :  { %308 = vmatpush.bf16.msra.mxu1 %v568_v27  ;;  %v640_v48 = vld [vmem:[%s1047_s3 + $0x84] sm:$0xf]  ;;  %v572_v49 = vor.u32 %v652_v46, %v571_v43  ;;  %v647_v53 = vld [vmem:[%s1047_s3 + $0xb8] sm:$0xf0]  ;;  %v503_v55 = vld [vmem:[%s1047_s3 + $0x50] sm:$0xf] }
   0xe   :  { %320 = vmatpush.bf16.msra.mxu2 %v592_v39  ;;  %v636_v56 = vld [vmem:[%s1047_s3 + $0x60] sm:$0xf0]  ;;  %v634_v57 = vld [vmem:[%s1047_s3 + $0x54] sm:$0xf]  ;;  %v505_v58 = vld [vmem:[%s1047_s3 + $0x64] sm:$0xf0]  ;;  %v536_v59 = vor.u32 %v640_v48, %v533_v51  ;;  %v552_v61 = vor.u32 %v647_v53, %v551_v52 }
   0xf   :  { %334 = vmatpush.bf16.msra.mxu3 %v576_v33  ;;  %v635_v60 = vld [vmem:[%s1047_s3 + $0x5c] sm:$0xf]  ;;  %v504_v62 = vor.u32 %v636_v56, %v503_v55  ;;  %v513_v63 = vld [vmem:[%s1047_s3 + $0x6c] sm:$0xf0]  ;;  %v531_v0 = vld [vmem:[%s1047_s3 + $0x80] sm:$0xf]  ;;  %v508_v2 = vor.u32 %v634_v57, %v505_v58 }
  0x10   :  { %296 = vmatpush.bf16.msra.mxu0 %v544_v36  ;;  %v642_v1 = vld [vmem:[%s1047_s3 + $0x90] sm:$0xf0]  ;;  %v483_v3 = vld [vmem:[%s1047_s3 + $0x28] sm:$0xf]  ;;  %v631_v4 = vld [vmem:[%s1047_s3 + $0x38] sm:$0xf0]  ;;  %v516_v7 = vor.u32 %v635_v60, %v513_v63 }
  0x11   :  { %309 = vmatpush.bf16.msra.mxu1 %v548_v40  ;;  %v629_v5 = vld [vmem:[%s1047_s3 + $0x2c] sm:$0xf]  ;;  %v485_v6 = vld [vmem:[%s1047_s3 + $0x3c] sm:$0xf0]  ;;  %v630_v8 = vld [vmem:[%s1047_s3 + $0x34] sm:$0xf]  ;;  %v532_v9 = vor.u32 %v642_v1, %v531_v0  ;;  %v484_v10 = vor.u32 %v631_v4, %v483_v3 }
  0x12   :  { %321 = vmatpush.bf16.msra.mxu2 %v572_v49  ;;  %v493_v11 = vld [vmem:[%s1047_s3 + $0x44] sm:$0xf0]  ;;  %v511_v12 = vld [vmem:[%s1047_s3 + $0x58] sm:$0xf]  ;;  %v637_v13 = vld [vmem:[%s1047_s3 + $0x68] sm:$0xf0]  ;;  %v488_v14 = vor.u32 %v629_v5, %v485_v6 }
  0x13   :  { %335 = vmatpush.bf16.msra.mxu3 %v556_v47  ;;  %v463_v15 = vld [vmem:[%s1047_s3] sm:$0xf]  ;;  %v626_v16 = vld [vmem:[%s1047_s3 + $0x10] sm:$0xf0]  ;;  %v624_v17 = vld [vmem:[%s1047_s3 + $0x4] sm:$0xf]  ;;  %v496_v21 = vor.u32 %v630_v8, %v493_v11  ;;  %v512_v22 = vor.u32 %v637_v13, %v511_v12 }
  0x14   :  { %297 = vmatpush.bf16.msra.mxu0 %v524_v50  ;;  %v465_v18 = vld [vmem:[%s1047_s3 + $0x14] sm:$0xf0]  ;;  %v619_v19 = vld [vmem:[%s1047_s3 + $0x128] sm:$0xf]  ;;  %v663_v20 = vld [vmem:[%s1047_s3 + $0x138] sm:$0xf0]  ;;  %v464_v23 = vor.u32 %v626_v16, %v463_v15 }
  0x15   :  { %310 = vmatpush.bf16.msra.mxu1 %v528_v54  ;;  %v625_v24 = vld [vmem:[%s1047_s3 + $0xc] sm:$0xf]  ;;  %v473_v25 = vld [vmem:[%s1047_s3 + $0x1c] sm:$0xf0] }
  0x16   :  { %322 = vmatpush.bf16.msra.mxu2 %v552_v61 }
  0x17   :  { %336 = vmatpush.bf16.msra.mxu3 %v536_v59 }
  0x18   :  { %298 = vmatpush.bf16.msra.mxu0 %v504_v62 }
  0x19   :  { %311 = vmatpush.bf16.msra.mxu1 %v508_v2 }
  0x1a   :  { %323 = vmatpush.bf16.msra.mxu2 %v532_v9 }
  0x1b   :  { %337 = vmatpush.bf16.msra.mxu3 %v516_v7 }
  0x1c   :  { %299 = vmatpush.bf16.msra.mxu0 %v484_v10 }
  0x1d   :  { %13 = vsyncpa [#allocation5], 0  ;;  %312 = vmatpush.bf16.msra.mxu1 %v488_v14  ;;  %v468_v26 = vor.u32 %v624_v17, %v465_v18  ;;  %v620_v27 = vor.u32 %v663_v20, %v619_v19  ;;  %v491_v28 = vld [vmem:[%s1047_s3 + $0x30] sm:$0xf]  ;;  %v632_v29 = vld [vmem:[%s1047_s3 + $0x40] sm:$0xf0]  ;;  %v476_v32 = vor.u32 %v625_v24, %v473_v25 }
  0x1e   :  { %v599_v30 = vld [vmem:[%s1047_s3 + $0x100] sm:$0xf]  ;;  %v658_v31 = vld [vmem:[%s1047_s3 + $0x110] sm:$0xf0]  ;;  %324 = vmatpush.bf16.msra.mxu2 %v512_v22  ;;  %v492_v34 = vor.u32 %v632_v29, %v491_v28  ;;  %v471_v36 = vld [vmem:[%s1047_s3 + $0x8] sm:$0xf] }
  0x1f   :  { %338 = vmatpush.bf16.msra.mxu3 %v496_v21  ;;  %v24_v33 = vld [vmem:[%s1044_s0] sm:$0xf]  ;;  %v600_v35 = vor.u32 %v658_v31, %v599_v30  ;;  %v627_v37 = vld [vmem:[%s1047_s3 + $0x18] sm:$0xf0]  ;;  %v579_v38 = vld [vmem:[%s1047_s3 + $0xd8] sm:$0xf] }
  0x20   :  { %300 = vmatpush.bf16.msra.mxu0 %v464_v23  ;;  %v653_v39 = vld [vmem:[%s1047_s3 + $0xe8] sm:$0xf0]  ;;  %v472_v40 = vor.u32 %v627_v37, %v471_v36  ;;  %v559_v42 = vld [vmem:[%s1047_s3 + $0xb0] sm:$0xf]  ;;  %v648_v43 = vld [vmem:[%s1047_s3 + $0xc0] sm:$0xf0] }
  0x21   :  { %313 = vmatpush.bf16.msra.mxu1 %v468_v26  ;;  %v580_v41 = vor.u32 %v653_v39, %v579_v38  ;;  %v560_v44 = vor.u32 %v648_v43, %v559_v42  ;;  %v539_v45 = vld [vmem:[%s1047_s3 + $0x88] sm:$0xf]  ;;  %v643_v46 = vld [vmem:[%s1047_s3 + $0x98] sm:$0xf0]  ;;  %v519_v48 = vld [vmem:[%s1047_s3 + $0x60] sm:$0xf] }
  0x22   :  { %325 = vmatpush.bf16.msra.mxu2 %v492_v34  ;;  %v540_v47 = vor.u32 %v643_v46, %v539_v45  ;;  %v638_v49 = vld [vmem:[%s1047_s3 + $0x70] sm:$0xf0]  ;;  %v499_v51 = vld [vmem:[%s1047_s3 + $0x38] sm:$0xf]  ;;  %v633_v52 = vld [vmem:[%s1047_s3 + $0x48] sm:$0xf0] }
  0x23   :  { %301 = vmatmul.bf16.vlgmr.msra.gmra.mxu0 %v24_v33  ;;  %339 = vmatpush.bf16.msra.mxu3 %v476_v32  ;;  %v520_v50 = vor.u32 %v638_v49, %v519_v48  ;;  %v500_v53 = vor.u32 %v633_v52, %v499_v51  ;;  %v479_v54 = vld [vmem:[%s1047_s3 + $0x10] sm:$0xf]  ;;  %v628_v55 = vld [vmem:[%s1047_s3 + $0x20] sm:$0xf0]  ;;  %s436_s19 = sshll.u32 %s1049_s5, 4  ;;  %s737_s5 = smov [#allocation4]   ;;  %s437_s19 = int_to_ptr.hbm [resolvable:$true] %s436_s19 }
  0x24   :  { %345 = vmatpush.bf16.msrb.mxu0 %v620_v27  ;;  %314 = vmatmul.bf16.vlgmr.msra.gmra.mxu1 %v24_v33  ;;  %v480_v56 = vor.u32 %v628_v55, %v479_v54  ;;  %v73_v57 = vld [vmem:[%s1048_s4] sm:$0x1f]  ;;  %s445_s20 = sshll.u32 %s737_s5, 4  ;;  %s447_s23 = sshll.u32 %s1050_s6, 4  ;;  %s446_s20 = int_to_ptr.vmem [resolvable:$true] %s445_s20  ;;  %s448_s23 = int_to_ptr.hbm [resolvable:$true] %s447_s23 }
  0x25   :  { %v75_v58 = vperm.slane %v73_v57, 0  ;;  %v76_v59 = vperm.slane %v73_v57, 1  ;;  %v78_v2 = vperm.slane %v73_v57, 3  ;;  %v77_v22 = vperm.slane %v73_v57, 2  ;;  %v417_v39 = vld [vmem:[%s1045_s1] sm:$0xff]  ;;  %s736_s1 = smov [#allocation2]  }
  0x26   :  { %340 = vmatmul.bf16.vlgmr.msra.gmra.mxu3 %v24_v33  ;;  %326 = vmatpush.bf16.msra.mxu2 %v472_v40  ;;  %v79_v23 = vperm.slane %v73_v57, 4  ;;  %v418_v40 = vld [vmem:[%s1046_s2] sm:$0xff]  ;;  %s434_s2 = sshll.u32 %s736_s1, 4  ;;  %s435_s2 = int_to_ptr.vmem [resolvable:$true] %s434_s2 }
  0x28   :  { %346 = vmatpush.bf16.msrb.mxu0 %v600_v35 }
  0x29   :  { %327 = vmatmul.bf16.vlgmr.msra.gmra.mxu2 %v24_v33 }
  0x2c   :  { %347 = vmatpush.bf16.msrb.mxu0 %v580_v41 }
  0x30   :  { %348 = vmatpush.bf16.msrb.mxu0 %v560_v44 }
  0x34   :  { %349 = vmatpush.bf16.msrb.mxu0 %v540_v47 }
  0x38   :  { %350 = vmatpush.bf16.msrb.mxu0 %v520_v50 }
  0x3c   :  { %351 = vmatpush.bf16.msrb.mxu0 %v500_v53 }
  0x40   :  { %352 = vmatpush.bf16.msrb.mxu0 %v480_v56 }
  0x43   :  { %353 = vmatmul.bf16.vlgmr.msrb.gmra.mxu0 %v24_v33 }
  0xa0   :  { %v302_v60 = vpop.f32.mrf.mxu0 }
  0xa1   :  { %v303_v61 = vadd.f32 %v302_v60, %v75_v58  ;;  %v315_v62 = vpop.f32.mrf.mxu1 }
  0xa2   :  { %v316_v63 = vadd.f32 %v315_v62, %v76_v59 }
  0xa3   :  { %v621_v0 = vmul.f32 -1.442695, %v303_v61 }
  0xa4   :  { %v622_v1 = vmul.f32 -1.442695, %v316_v63 }
  0xa5   :  { %666 = vpow2.f32 %v621_v0 }
  0xa6   :  { %668 = vpow2.f32 %v622_v1 }
  0xa8   :  { %v304_v3 = vpop.f32.mrf.mxu0 }
  0xa9   :  { %v341_v4 = vpop.f32.mrf.mxu3  ;;  %v317_v5 = vpop.f32.mrf.mxu1 }
  0xaa   :  { %v342_v6 = vadd.f32 %v341_v4, %v78_v2 }
  0xab   :  { %v667_v7 = vpop.eup %666 }
  0xac   :  { %v669_v8 = vpop.eup %668  ;;  %v361_v9 = vadd.f32 1.0, %v667_v7  ;;  %v623_v10 = vmul.f32 -1.442695, %v342_v6  ;;  %v328_v12 = vpop.f32.mrf.mxu2 }
  0xad   :  { %v380_v11 = vadd.f32 1.0, %v669_v8  ;;  %v329_v27 = vadd.f32 %v328_v12, %v77_v22 }
  0xae   :  { %670 = vrcp.f32 %v361_v9  ;;  %vm367_vm0 = vweird.f32 %v361_v9  ;;  %v373_v31 = vand.u32 2147483648, %v361_v9  ;;  %v371_v33 = vand.u32 2147483647, %v361_v9 }
  0xaf   :  { %672 = vrcp.f32 %v380_v11  ;;  %vm386_vm2 = vweird.f32 %v380_v11  ;;  %v392_v36 = vand.u32 2147483648, %v380_v11  ;;  %v390_v38 = vand.u32 2147483647, %v380_v11 }
  0xb0   :  { %674 = vpow2.f32 %v623_v10  ;;  %v374_v41 = vor.u32 1.1754944e-38, %v373_v31  ;;  %vm372_vm6 = vcmp.eq.f32.partialorder %v371_v33, 8.507059e+37 }
  0xb1   :  { %v343_v13 = vpop.f32.mrf.mxu3  ;;  %v393_v45 = vor.u32 1.1754944e-38, %v392_v36  ;;  %vm391_vm7 = vcmp.eq.f32.partialorder %v390_v38, 8.507059e+37 }
  0xb4   :  { %v671_v14 = vpop.eup %670  ;;  %v330_v18 = vpop.f32.mrf.mxu2 }
  0xb5   :  { %v673_v15 = vpop.eup %672  ;;  %v363_v16 = vmul.f32 %v671_v14, %v361_v9  ;;  %vm368_vm1 = vweird.f32 %v671_v14 }
  0xb6   :  { %v675_v17 = vpop.eup %674  ;;  %v382_v19 = vmul.f32 %v673_v15, %v380_v11  ;;  %vm387_vm3 = vweird.f32 %v673_v15  ;;  %vm1023_vm4 = vmor %vm367_vm0, %vm368_vm1 }
  0xb7   :  { %v1019_v20 = vadd.f32 1.0, %v675_v17  ;;  %v364_v21 = vsub.f32 1.0, %v363_v16  ;;  %vm388_vm5 = vmor %vm386_vm2, %vm387_vm3 }
  0xb8   :  { %v383_v24 = vsub.f32 1.0, %v382_v19 }
  0xb9   :  { %676 = vrcp.f32 %v1019_v20  ;;  %v365_v26 = vmul.f32 %v671_v14, %v364_v21  ;;  %vm406_vm8 = vweird.f32 %v1019_v20  ;;  %v412_v58 = vand.u32 2147483648, %v1019_v20 }
  0xba   :  { %v384_v30 = vmul.f32 %v673_v15, %v383_v24  ;;  %v410_v60 = vand.u32 2147483647, %v1019_v20 }
  0xbb   :  { %v366_v32 = vadd.f32 %v671_v14, %v365_v26  ;;  %v413_v61 = vor.u32 1.1754944e-38, %v412_v58 }
  0xbc   :  { %v385_v37 = vadd.f32 %v673_v15, %v384_v30  ;;  %vm411_vm11 = vcmp.eq.f32.partialorder %v410_v60, 8.507059e+37 }
  0xbd   :  { %v370_v43 = vsel %vm1023_vm4, %v671_v14, %v366_v32 }
  0xbe   :  { %v389_v49 = vsel %vm388_vm5, %v673_v15, %v385_v37  ;;  %v375_v51 = vsel %vm372_vm6, %v374_v41, %v370_v43 }
  0xbf   :  { %v677_v29 = vpop.eup %676  ;;  %v394_v53 = vsel %vm391_vm7, %v393_v45, %v389_v49 }
  0xc0   :  { %v354_v25 = vpop.f32.mrf.mxu0  ;;  %v402_v34 = vmul.f32 %v677_v29, %v1019_v20  ;;  %vm407_vm9 = vweird.f32 %v677_v29 }
  0xc1   :  { %v355_v28 = vadd.f32 %v354_v25, %v79_v23  ;;  %vm408_vm10 = vmor %vm406_vm8, %vm407_vm9 }
  0xc2   :  { %v403_v46 = vsub.f32 1.0, %v402_v34 }
  0xc3   :  { %678 = vtanh.f32 %v355_v28 }
  0xc4   :  { %680 = vtanh.f32 %v329_v27  ;;  %v404_v54 = vmul.f32 %v677_v29, %v403_v46 }
  0xc6   :  { %v405_v59 = vadd.f32 %v677_v29, %v404_v54 }
  0xc8   :  { %v356_v42 = vpop.f32.mrf.mxu0  ;;  %v409_v62 = vsel %vm408_vm10, %v677_v29, %v405_v59 }
  0xc9   :  { %v679_v44 = vpop.eup %678  ;;  %v414_v0 = vsel %vm411_vm11, %v413_v61, %v409_v62 }
  0xca   :  { %v419_v47 = vsub.f32 %v417_v39, %v679_v44  ;;  %v420_v48 = vmul.f32 %v679_v44, %v418_v40  ;;  %v681_v50 = vpop.eup %680 }
  0xcb   :  { %v423_v56 = vmul.f32 %v681_v50, %v375_v51 }
  0xcc   :  { %v421_v52 = vadd.f32 %v420_v48, %v419_v47 }
  0xce   :  { %v422_v55 = vmul.f32 %v421_v52, %v394_v53 }
  0xd0   :  { %v424_v57 = vadd.f32 %v423_v56, %v422_v55 }
  0xd2   :  { %682 = vtanh.f32 %v424_v57  ;;  %427 = vst [vmem:[#allocation2] sm:$0xff] %v424_v57 }
  0xd3   :  { %439 = dma.vmem_to_hbm [thread:$0]  %s435_s2, 128, %s437_s19, [#allocation3]  }
  0xd8   :  { %v683_v63 = vpop.eup %682 }
  0xd9   :  { %v426_v1 = vmul.f32 %v683_v63, %v414_v0 }
  0xdb   :  { %428 = vst [vmem:[#allocation4] sm:$0xff] %v426_v1 }
  0xdc   :  { %450 = dma.vmem_to_hbm [thread:$0]  %s446_s20, 128, %s448_s23, [#allocation5]  }
  0xdd   :  { %732 = dma.done.wait [#allocation3], 128  }
  0xde   :  { %733 = vsyncadd [#allocation3], 4294967168 }
  0xdf   :  { %734 = dma.done.wait [#allocation5], 128  }
  0xe0   :  { %735 = vsyncadd [#allocation5], 4294967168 }
  0xe1   :  { %459 = vsyncpa [#allocation3], 1 }
  0xe2   :  { %460 = vsyncpa [#allocation5], 1 }

</bundles_post_ra>
